<compile_context>
chip_gen: v6e
topology: v6e:2x2x1
jax: 0.10.0
libtpu: 0.0.40
codegen_flags: <defaults>
</compile_context>

<pallas_src>
import jax
import jax.numpy as jnp
from jax.experimental import pallas as pl
from jax.experimental.pallas import tpu as pltpu

LANES = 128


def mlp_kernel(params_ref, x_ref, o_ref):
    # params_ref: SMEM (7,) f32  [w1_0, w1_1, b1_0, b1_1, w2_0, w2_1, b2_0]
    # x_ref / o_ref: VMEM (tile_rows, 128) f32 lane-dense batch slab
    w1_0 = params_ref[0]
    w1_1 = params_ref[1]
    b1_0 = params_ref[2]
    b1_1 = params_ref[3]
    w2_0 = params_ref[4]
    w2_1 = params_ref[5]
    b2_0 = params_ref[6]

    x = x_ref[...]
    h0 = jnp.maximum(x * w1_0 + b1_0, 0.0)   # hidden unit 0 (elementwise, VPU)
    h1 = jnp.maximum(x * w1_1 + b1_1, 0.0)   # hidden unit 1
    o_ref[...] = h0 * w2_0 + h1 * w2_1 + b2_0


def pack_params(w1, b1, w2, b2):
    """Pack all 7 scalars into one (7,) f32 array (done once at init, not per call)."""
    return jnp.concatenate(
        [w1.reshape(-1), b1.reshape(-1), w2.reshape(-1), b2.reshape(-1)]
    ).astype(jnp.float32)


def simple_neural_network(x, params, *, max_tile_rows=1024):
    """x: (N, 1) f32. params: packed (7,) f32. Returns (N, 1) f32."""
    n = x.shape[0]

    # Lane-dense slab: pad N up so it reshapes to (rows, 128) with rows a multiple
    # of the tile height (tile height itself a multiple of 8 sublanes).
    rows = max(8, pl.cdiv(n, LANES))
    rows = ((rows + 7) // 8) * 8
    tile_rows = min(max_tile_rows, rows)
    rows = ((rows + tile_rows - 1) // tile_rows) * tile_rows
    padded_n = rows * LANES

    flat = jnp.pad(x.reshape(-1), (0, padded_n - n))
    slab = flat.reshape(rows, LANES)

    out_slab = pl.pallas_call(
        mlp_kernel,
        out_shape=jax.ShapeDtypeStruct((rows, LANES), jnp.float32),
        grid=(rows // tile_rows,),
        in_specs=[
            # Whole parameter vector in SMEM every grid step (7 scalars, trivial).
            pl.BlockSpec(memory_space=pltpu.MemorySpace.SMEM),
            # Lane-dense input blocks, double-buffered by the Pallas pipeline.
            pl.BlockSpec((tile_rows, LANES), lambda i: (i, 0)),
        ],
        out_specs=pl.BlockSpec((tile_rows, LANES), lambda i: (i, 0)),
        compiler_params=pltpu.CompilerParams(
            dimension_semantics=("parallel",),  # shard grid across TCs on v7x
        ),
        cost_estimate=pl.CostEstimate(
            flops=8 * padded_n,            # ~8 VPU flops per element
            transcendentals=0,
            bytes_accessed=8 * padded_n,   # 4B in + 4B out per element
        ),
    )(params, slab)

    return out_slab.reshape(-1)[:n].reshape(n, 1)


def init_params(key):
    """Deterministic init mimicking PyTorch nn.Linear defaults: U(-1/sqrt(fan_in), 1/sqrt(fan_in))."""
    k1, k2, k3, k4 = jax.random.split(key, 4)
    bound1 = 1.0 / jnp.sqrt(1.0)   # fc1 fan_in = 1
    bound2 = 1.0 / jnp.sqrt(2.0)   # fc2 fan_in = 2
    # Stored as (in_features, out_features) == PyTorch weight transposed.
    w1 = jax.random.uniform(k1, (1, 2), jnp.float32, -bound1, bound1)
    b1 = jax.random.uniform(k2, (2,), jnp.float32, -bound1, bound1)
    w2 = jax.random.uniform(k3, (2, 1), jnp.float32, -bound2, bound2)
    b2 = jax.random.uniform(k4, (1,), jnp.float32, -bound2, bound2)
    return w1, b1, w2, b2


if __name__ == "__main__":
    key = jax.random.PRNGKey(0)
    k_params, k_x = jax.random.split(key)

    w1, b1, w2, b2 = init_params(k_params)
    params = pack_params(w1, b1, w2, b2)   # packed once, reused across calls
    x = jax.random.normal(k_x, (8, 1), jnp.float32)   # batch of 8 scalar inputs

    out = simple_neural_network(x, params)
    out = jax.block_until_ready(out)

    # Reference check in plain JAX (same math as the PyTorch module).
    ref = jnp.maximum(x @ w1 + b1[None, :], 0.0) @ w2 + b2[None, :]
    assert out.shape == (8, 1)
    assert jnp.allclose(out, ref, atol=1e-6), "mismatch vs reference"

    print("KERNEL_OK")
</pallas_src>

<mosaic_0001>
module attributes {stable_mosaic.version = 11 : i64} {
  func.func @mlp_kernel(%arg0: i32, %arg1: memref<7xf32, #tpu.memory_space<smem>>, %arg2: memref<8x128xf32, #tpu.memory_space<vmem>>, %arg3: memref<8x128xf32, #tpu.memory_space<vmem>>) attributes {dimension_semantics = [#tpu.dimension_semantics<parallel>], iteration_bounds = array<i64: 1>, scalar_prefetch = 0 : i64, scratch_operands = 0 : i64, tpu.core_type = #tpu.core_type<tc>, window_params = [{transform_indices = @transform_0, window_bounds = array<i64: 7>}, {transform_indices = @transform_1, window_bounds = array<i64: 8, 128>}, {transform_indices = @transform_2, window_bounds = array<i64: 8, 128>}]} {
    %c0 = arith.constant 0 : index
    %0 = memref.load %arg1[%c0] : memref<7xf32, #tpu.memory_space<smem>>
    %c1 = arith.constant 1 : index
    %1 = memref.load %arg1[%c1] : memref<7xf32, #tpu.memory_space<smem>>
    %c2 = arith.constant 2 : index
    %2 = memref.load %arg1[%c2] : memref<7xf32, #tpu.memory_space<smem>>
    %c3 = arith.constant 3 : index
    %3 = memref.load %arg1[%c3] : memref<7xf32, #tpu.memory_space<smem>>
    %c4 = arith.constant 4 : index
    %4 = memref.load %arg1[%c4] : memref<7xf32, #tpu.memory_space<smem>>
    %c5 = arith.constant 5 : index
    %5 = memref.load %arg1[%c5] : memref<7xf32, #tpu.memory_space<smem>>
    %c6 = arith.constant 6 : index
    %6 = memref.load %arg1[%c6] : memref<7xf32, #tpu.memory_space<smem>>
    %c0_0 = arith.constant 0 : index
    %c0_1 = arith.constant 0 : index
    %7 = vector.load %arg2[%c0_0, %c0_1] : memref<8x128xf32, #tpu.memory_space<vmem>>, vector<8x128xf32>
    %8 = vector.broadcast %0 : f32 to vector<8x128xf32>
    %9 = arith.mulf %7, %8 : vector<8x128xf32>
    %10 = vector.broadcast %2 : f32 to vector<8x128xf32>
    %11 = arith.addf %9, %10 : vector<8x128xf32>
    %cst = arith.constant 0.000000e+00 : f32
    %12 = vector.broadcast %cst : f32 to vector<8x128xf32>
    %13 = arith.maximumf %11, %12 : vector<8x128xf32>
    %14 = vector.broadcast %1 : f32 to vector<8x128xf32>
    %15 = arith.mulf %7, %14 : vector<8x128xf32>
    %16 = vector.broadcast %3 : f32 to vector<8x128xf32>
    %17 = arith.addf %15, %16 : vector<8x128xf32>
    %cst_2 = arith.constant 0.000000e+00 : f32
    %18 = vector.broadcast %cst_2 : f32 to vector<8x128xf32>
    %19 = arith.maximumf %17, %18 : vector<8x128xf32>
    %20 = vector.broadcast %4 : f32 to vector<8x128xf32>
    %21 = arith.mulf %13, %20 : vector<8x128xf32>
    %22 = vector.broadcast %5 : f32 to vector<8x128xf32>
    %23 = arith.mulf %19, %22 : vector<8x128xf32>
    %24 = arith.addf %21, %23 : vector<8x128xf32>
    %25 = vector.broadcast %6 : f32 to vector<8x128xf32>
    %26 = arith.addf %24, %25 : vector<8x128xf32>
    %c0_3 = arith.constant 0 : index
    %c0_4 = arith.constant 0 : index
    %27 = vector.load %arg3[%c0_3, %c0_4] : memref<8x128xf32, #tpu.memory_space<vmem>>, vector<8x128xf32>
    tpu.vector_store %arg3[%c0_3, %c0_4], %26 {strides = array<i32>} : memref<8x128xf32, #tpu.memory_space<vmem>>, vector<8x128xf32>,
    return
  }
  func.func @transform_0(%arg0: i32) -> i32 {
    %c0_i32 = arith.constant 0 : i32
    %c0_i32_0 = arith.constant 0 : i32
    return %c0_i32 : i32
  }
  func.func @transform_1(%arg0: i32) -> (i32, i32) {
    %c0_i32 = arith.constant 0 : i32
    %c0_i32_0 = arith.constant 0 : i32
    return %arg0, %c0_i32 : i32, i32
  }
  func.func @transform_2(%arg0: i32) -> (i32, i32) {
    %c0_i32 = arith.constant 0 : i32
    %c0_i32_0 = arith.constant 0 : i32
    return %arg0, %c0_i32 : i32, i32
  }
}

</mosaic_0001>

<bundles_post_ra>
// kernel: tpu_custom_call.1
= control target key start
LH: loop header
LB: loop body
LE: loop exit
PB: predicated region body
PF: predicated region fallthrough
CT: control target
= control target key end

     0   :  { %7 = vsyncpa [#allocation5], 0  ;;  %s167_s0 = inlined_call_operand.hbm [shape: f32[7], index: 0, kind: input, shape index: {}]   ;;  %s168_s1 = inlined_call_operand.hbm [shape: f32[8,128], index: 1, kind: input, shape index: {}]   ;;  %s169_s2 = inlined_call_operand.hbm [shape: f32[8,128], index: 2, kind: output, shape index: {}]  }
   0x1   :  { %8 = vsyncpa [#allocation3], 0 }
   0x2   :  { %9 = vsyncpa [#allocation4], 0  ;;  %s140_s9 = smov [#allocation2]   ;;  %s141_s12 = smov [#allocation6]  }
   0x3   :  { %17 = dma.hbm_to_smem %s167_s0, 16, %s140_s9, [#allocation5]  }
   0x4   :  { %s24_s13 = sshll.u32 %s141_s12, 4  ;;  %s25_s13 = int_to_ptr.vmem [resolvable:$true] %s24_s13 }
   0x5   :  { %s102_s14 = scalar_lea.vmem %s25_s13, 128  ;;  %p107_p1 = scmp.lt.s32.totalorder %s25_s13, %s25_s13 }
   0x6   :  { %p103_p0 = scmp.ne.s32.totalorder %s25_s13, %s102_s14  ;;  %p108_p2 = scmp.lt.s32.totalorder %s102_s14, %s102_s14 }
   0x8   :  { %p109_p3 = por %p108_p2, %p107_p1 }
   0xa   :  { %p110_p4 = pnand %p109_p3, %p103_p0 }
   0xc   :  { %113 = shalt.err (!%p110_p4)
}
   0xd   :  { %27 = dma.hbm_to_vmem [thread:$0]  %s168_s1, 128, %s25_s13, [#allocation3]  }
   0xe   :  { %134 = dma.done.wait [#allocation5], 16  }
   0xf   :  { %135 = vsyncadd [#allocation5], 4294967280 }
  0x10   :  { %136 = dma.done.wait [#allocation3], 128  }
  0x11   :  { %137 = vsyncadd [#allocation3], 4294967168 }
  0x12   :  { %34 = sfence }
  0x13   :  { %s35_s0 = sld [smem:[#allocation2]]  ;;  %v42_v0 = vld [vmem:[#allocation6] sm:$0xff]  ;;  %s142_s1 = smov [#allocation7]  }
  0x14   :  { %s77_s17 = sld [smem:[#allocation2 + $0x1]]  ;;  %s67_s23 = sshll.u32 %s142_s1, 4  ;;  %s68_s23 = int_to_ptr.vmem [resolvable:$true] %s67_s23 }
  0x15   :  { %s78_s18 = sld [smem:[#allocation2 + $0x2]]  ;;  %s114_s24 = scalar_lea.vmem %s68_s23, 128 }
  0x16   :  { %s79_s19 = sld [smem:[#allocation2 + $0x3]]  ;;  %p115_p5 = scmp.ne.s32.totalorder %s68_s23, %s114_s24 }
  0x17   :  { %s80_s20 = sld [smem:[#allocation2 + $0x4]]  ;;  %p119_p6 = scmp.lt.s32.totalorder %s68_s23, %s68_s23 }
  0x18   :  { %s81_s21 = sld [smem:[#allocation2 + $0x5]]  ;;  %p120_p7 = scmp.lt.s32.totalorder %s114_s24, %s114_s24 }
  0x19   :  { %v43_v1 = vstv %s35_s0  ;;  %s82_s22 = sld [smem:[#allocation2 + $0x6]] }
  0x1a   :  { %v44_v2 = vmul.f32 %v43_v1, %v42_v0  ;;  %v48_v3 = vstv %s77_s17  ;;  %p121_p8 = por %p120_p7, %p119_p6 }
  0x1b   :  { %v45_v4 = vstv %s78_s18  ;;  %v49_v5 = vmul.f32 %v48_v3, %v42_v0 }
  0x1c   :  { %v46_v6 = vadd.f32 %v45_v4, %v44_v2  ;;  %v50_v7 = vstv %s79_s19  ;;  %p122_p9 = pnand %p121_p8, %p115_p5 }
  0x1d   :  { %v51_v8 = vadd.f32 %v50_v7, %v49_v5  ;;  %v53_v9 = vstv %s80_s20 }
  0x1e   :  { %v47_v10 = vmax.f32 %v46_v6, 0.0  ;;  %v55_v11 = vstv %s81_s21 }
  0x1f   :  { %v52_v12 = vmax.f32 %v51_v8, 0.0  ;;  %v58_v15 = vstv %s82_s22 }
  0x20   :  { %v54_v13 = vmul.f32 %v53_v9, %v47_v10 }
  0x21   :  { %v56_v14 = vmul.f32 %v55_v11, %v52_v12 }
  0x23   :  { %v57_v16 = vadd.f32 %v56_v14, %v54_v13 }
  0x25   :  { %v59_v17 = vadd.f32 %v58_v15, %v57_v16 }
  0x27   :  { %60 = vst [vmem:[#allocation7] sm:$0xff] %v59_v17 }
  0x28   :  { %125 = shalt.err (!%p122_p9)
}
  0x29   :  { %70 = dma.vmem_to_hbm [thread:$0]  %s68_s23, 128, %s169_s2, [#allocation4]  }
  0x2a   :  { %138 = dma.done.wait [#allocation4], 128  }
  0x2b   :  { %139 = vsyncadd [#allocation4], 4294967168 }
  0x2c   :  { %74 = vsyncpa [#allocation3], 1 }
  0x2d   :  { %75 = vsyncpa [#allocation4], 1 }
  0x2e   :  { %76 = vsyncpa [#allocation5], 1 }

</bundles_post_ra>
